<compile_context>
chip_gen: v7x
topology: tpu7x:2x2x1
jax: 0.10.0
libtpu: 0.0.40
codegen_flags: <defaults>
</compile_context>

<pallas_src>
import jax
import jax.numpy as jnp
from jax.experimental import pallas as pl
from jax.experimental.pallas import tpu as pltpu

MAX_POSITION_LEN = 512
HIDDEN_SIZE = 32
BATCH = 2
SEQ_LEN = 8


def pos_emb_kernel(ids_ref, table_ref, out_ref):
    """Embedding row-gather for one row tile via a one-hot matmul on the MXU.

    ids_ref:   VMEM (rows, 1)                       int32  position ids
    table_ref: VMEM (MAX_POSITION_LEN, HIDDEN_SIZE) f32    full table (resident)
    out_ref:   VMEM (rows, HIDDEN_SIZE)             f32    gathered rows
    """
    rows = out_ref.shape[0]
    max_pos = table_ref.shape[0]

    ids = ids_ref[...]                                              # (rows, 1)
    iota = jax.lax.broadcasted_iota(jnp.int32, (rows, max_pos), 1)  # (rows, MAX_POS)
    onehot = (iota == ids).astype(table_ref.dtype)                  # VPU compare

    # TODO(synk): on v5e cast onehot (and the table, if bf16 weights are
    # acceptable) to bf16 before the dot — values stay exactly 0/1 — to avoid
    # the f32 multi-pass MXU decomposition. Kept f32 here so the result is
    # bit-exact vs the f32 reference gather.
    out_ref[...] = jnp.dot(
        onehot, table_ref[...], preferred_element_type=jnp.float32
    ).astype(out_ref.dtype)


def positional_embedding(ids, table, *, max_rows_per_step=1024):
    """ids: (batch, seq) int; table: (max_pos, hidden) f32.
    Returns (batch, seq, hidden) f32, identical to nn.Embedding(ids)."""
    batch, seq = ids.shape
    max_pos, hidden = table.shape
    bs = batch * seq
    itemsize = jnp.dtype(table.dtype).itemsize

    ids_flat = ids.reshape(bs).astype(jnp.int32)

    # Row-tile size: whole problem in one step when small; otherwise a
    # sublane-aligned tile capped so the (rows, max_pos) f32 one-hot plus
    # double-buffered ids/out blocks fit the v7x VMEM budget.
    if bs <= max_rows_per_step:
        rows, padded = bs, bs
    else:
        rows = max_rows_per_step                      # multiple of 8 (sublane)
        padded = pl.cdiv(bs, rows) * rows
        ids_flat = jnp.pad(ids_flat, (0, padded - bs))  # pad rows gather row 0, sliced off
    ids_col = ids_flat.reshape(padded, 1)

    flat = pl.pallas_call(
        pos_emb_kernel,
        out_shape=jax.ShapeDtypeStruct((padded, hidden), table.dtype),
        grid_spec=pltpu.PrefetchScalarGridSpec(
            num_scalar_prefetch=0,
            grid=(padded // rows,),
            in_specs=[
                # Per-step ids tile.
                pl.BlockSpec((rows, 1), lambda i: (i, 0)),
                # Constant block index -> table DMA'd once, resident across steps.
                pl.BlockSpec((max_pos, hidden), lambda i: (0, 0)),
            ],
            out_specs=pl.BlockSpec((rows, hidden), lambda i: (i, 0)),
        ),
        # Independent row tiles: shard across both TensorCores on v7x.
        compiler_params=pltpu.CompilerParams(dimension_semantics=("parallel",)),
        # Mem-bound gather: ~0 useful FLOPs, accurate byte traffic.
        cost_estimate=pl.CostEstimate(
            flops=0,
            transcendentals=0,
            bytes_accessed=(
                padded * 4
                + max_pos * hidden * itemsize
                + padded * hidden * itemsize
            ),
        ),
    )(ids_col, table)

    return flat[:bs].reshape(batch, seq, hidden)


if __name__ == "__main__":
    key = jax.random.PRNGKey(0)
    k_ids, k_tab, k_ids2 = jax.random.split(key, 3)

    # Deterministic "parameters": nn.Embedding default init is N(0, 1).
    table = jax.random.normal(
        k_tab, (MAX_POSITION_LEN, HIDDEN_SIZE), dtype=jnp.float32
    )
    # Position ids (any ids in [0, max_position_len) are valid).
    ids = jax.random.randint(
        k_ids, (BATCH, SEQ_LEN), 0, MAX_POSITION_LEN, dtype=jnp.int32
    )

    out = positional_embedding(ids, table)
    out = jax.block_until_ready(out)

    # Reference check (plain JAX gather == torch nn.Embedding forward).
    ref = jnp.take(table, ids, axis=0)
    assert out.shape == (BATCH, SEQ_LEN, HIDDEN_SIZE)
    assert out.dtype == jnp.float32
    assert jnp.allclose(out, ref), "mismatch vs reference gather"

    # Also exercise the multi-step (gridded + padded) path used at larger bs.
    ids_big = jax.random.randint(k_ids2, (2, 9), 0, MAX_POSITION_LEN, dtype=jnp.int32)
    out_big = jax.block_until_ready(
        positional_embedding(ids_big, table, max_rows_per_step=8)
    )
    assert jnp.allclose(out_big, jnp.take(table, ids_big, axis=0)), \
        "mismatch vs reference gather (tiled path)"

    print("KERNEL_OK")
</pallas_src>

<mosaic_0001>
module attributes {stable_mosaic.version = 11 : i64} {
  func.func @pos_emb_kernel(%arg0: i32, %arg1: memref<16x1xi32, #tpu.memory_space<vmem>>, %arg2: memref<512x32xf32, #tpu.memory_space<vmem>>, %arg3: memref<16x32xf32, #tpu.memory_space<vmem>>) attributes {dimension_semantics = [#tpu.dimension_semantics<parallel>], iteration_bounds = array<i64: 1>, scalar_prefetch = 0 : i64, scratch_operands = 0 : i64, tpu.core_type = #tpu.core_type<tc>, window_params = [{transform_indices = @transform_0, window_bounds = array<i64: 16, 1>}, {pipeline_mode = #tpu.pipeline_mode<synchronous>, transform_indices = @transform_1, window_bounds = array<i64: 512, 32>}, {transform_indices = @transform_2, window_bounds = array<i64: 16, 32>}]} {
    %c0 = arith.constant 0 : index
    %c0_0 = arith.constant 0 : index
    %0 = vector.load %arg1[%c0, %c0_0] : memref<16x1xi32, #tpu.memory_space<vmem>>, vector<16x1xi32>
    %1 = tpu.iota {dimensions = array<i32: 1>} : vector<16x512xi32>
    %2 = vector.broadcast %0 : vector<16x1xi32> to vector<16x512xi32>
    %3 = arith.cmpi eq, %1, %2 : vector<16x512xi32>
    %4 = arith.extui %3 : vector<16x512xi1> to vector<16x512xi32>
    %5 = arith.sitofp %4 : vector<16x512xi32> to vector<16x512xf32>
    %c0_1 = arith.constant 0 : index
    %c0_2 = arith.constant 0 : index
    %6 = vector.load %arg2[%c0_1, %c0_2] : memref<512x32xf32, #tpu.memory_space<vmem>>, vector<512x32xf32>
    %cst = arith.constant dense<0.000000e+00> : vector<16x32xf32>
    %7 = tpu.matmul %5, %6, %cst {dimension_numbers = #tpu.dot_dimension_numbers<[1], [0], [0], [1], [0, 0, 1, 1], [], []>} : vector<16x512xf32>, vector<512x32xf32>, vector<16x32xf32> -> vector<16x32xf32>
    %c0_3 = arith.constant 0 : index
    %c0_4 = arith.constant 0 : index
    %8 = vector.load %arg3[%c0_3, %c0_4] : memref<16x32xf32, #tpu.memory_space<vmem>>, vector<16x32xf32>
    tpu.vector_store %arg3[%c0_3, %c0_4], %7 {strides = array<i32>} : memref<16x32xf32, #tpu.memory_space<vmem>>, vector<16x32xf32>,
    return
  }
  func.func @transform_0(%arg0: i32) -> (i32, i32) {
    %c0_i32 = arith.constant 0 : i32
    %c0_i32_0 = arith.constant 0 : i32
    return %arg0, %c0_i32 : i32, i32
  }
  func.func @transform_1(%arg0: i32) -> (i32, i32) {
    %c0_i32 = arith.constant 0 : i32
    %c0_i32_0 = arith.constant 0 : i32
    %c0_i32_1 = arith.constant 0 : i32
    return %c0_i32, %c0_i32_0 : i32, i32
  }
  func.func @transform_2(%arg0: i32) -> (i32, i32) {
    %c0_i32 = arith.constant 0 : i32
    %c0_i32_0 = arith.constant 0 : i32
    return %arg0, %c0_i32 : i32, i32
  }
}

</mosaic_0001>

<bundles_post_ra>
// kernel: tpu_custom_call.1
= control target key start
LH: loop header
LB: loop body
LE: loop exit
PB: predicated region body
PF: predicated region fallthrough
CT: control target
= control target key end

     0   :  { %v468_v2 = vmov 0   ;;  %s698_s0 = inlined_call_operand.vmem [shape: s32[16,1], index: 0, kind: input, shape index: {}]   ;;  %s699_s1 = inlined_call_operand.vmem [shape: f32[512,32], index: 1, kind: input, shape index: {}]   ;;  %s700_s2 = inlined_call_operand.hbm [shape: f32[16,32], index: 2, kind: output, shape index: {}]  }
   0x1   :  { %v12_v0 = vld [vmem:[%s698_s0] sm:$0xff]  ;;  %443 = vset.pattern.permute.xlu0 %v468_v2  ;;  %v13_v3 = vld [vmem:[%s698_s0 + $0x8] sm:$0xff]  ;;  %v67_v14 = vld [vmem:[%s699_s1 + $0x90] sm:$0xff] }
   0x2   :  { %v65_v1 = vld [vmem:[%s699_s1 + $0x80] sm:$0xff]  ;;  %v66_v4 = vld [vmem:[%s699_s1 + $0x88] sm:$0xff]  ;;  %20 = vperm.xlu0 %443, %v12_v0   ;;  %v68_v15 = vld [vmem:[%s699_s1 + $0x98] sm:$0xff] }
   0x3   :  { %v97_v5 = vld [vmem:[%s699_s1 + $0x180] sm:$0xff]  ;;  %v98_v6 = vld [vmem:[%s699_s1 + $0x188] sm:$0xff]  ;;  %v374_v7 = vpack.c.bf16 %v66_v4, %v65_v1  ;;  %v378_v17 = vpack.c.bf16 %v68_v15, %v67_v14  ;;  %v99_v18 = vld [vmem:[%s699_s1 + $0x190] sm:$0xff] }
   0x4   :  { %v406_v8 = vpack.c.bf16 %v98_v6, %v97_v5  ;;  %v49_v9 = vld [vmem:[%s699_s1] sm:$0xff]  ;;  %v50_v10 = vld [vmem:[%s699_s1 + $0x8] sm:$0xff]  ;;  %v100_v19 = vld [vmem:[%s699_s1 + $0x198] sm:$0xff] }
   0x5   :  { %v81_v11 = vld [vmem:[%s699_s1 + $0x100] sm:$0xff]  ;;  %v376_v12 = vpack.c.bf16 %v50_v10, %v49_v9  ;;  %v82_v13 = vld [vmem:[%s699_s1 + $0x108] sm:$0xff]  ;;  %375 = vmatprep.subr.bf16.mxu0 %v374_v7  ;;  %v51_v20 = vld [vmem:[%s699_s1 + $0x10] sm:$0xff]  ;;  %v410_v21 = vpack.c.bf16 %v100_v19, %v99_v18 }
   0x6   :  { %407 = vmatprep.subr.bf16.mxu1 %v406_v8  ;;  %v408_v16 = vpack.c.bf16 %v82_v13, %v81_v11  ;;  %v52_v22 = vld [vmem:[%s699_s1 + $0x18] sm:$0xff]  ;;  %v83_v23 = vld [vmem:[%s699_s1 + $0x110] sm:$0xff]  ;;  %23 = vperm.xlu0 %443, %v13_v3   ;;  %v69_v27 = vld [vmem:[%s699_s1 + $0xa0] sm:$0xff] }
   0x7   :  { %377 = vmatpush3.bf16.msra.mxu0 %v376_v12  ;;  %v84_v24 = vld [vmem:[%s699_s1 + $0x118] sm:$0xff]  ;;  %v380_v25 = vpack.c.bf16 %v52_v22, %v51_v20  ;;  %v70_v28 = vld [vmem:[%s699_s1 + $0xa8] sm:$0xff]  ;;  %v101_v29 = vld [vmem:[%s699_s1 + $0x1a0] sm:$0xff] }
   0x8   :  { %409 = vmatpush3.bf16.msra.mxu1 %v408_v16  ;;  %v412_v26 = vpack.c.bf16 %v84_v24, %v83_v23  ;;  %379 = vmatprep.subr.bf16.mxu0 %v378_v17  ;;  %v382_v30 = vpack.c.bf16 %v70_v28, %v69_v27  ;;  %v102_v31 = vld [vmem:[%s699_s1 + $0x1a8] sm:$0xff]  ;;  %v53_v32 = vld [vmem:[%s699_s1 + $0x20] sm:$0xff]  ;;  %v71_v37 = vld [vmem:[%s699_s1 + $0xb0] sm:$0xff] }
   0x9   :  { %411 = vmatprep.subr.bf16.mxu1 %v410_v21  ;;  %v54_v33 = vld [vmem:[%s699_s1 + $0x28] sm:$0xff]  ;;  %v414_v34 = vpack.c.bf16 %v102_v31, %v101_v29  ;;  %v85_v35 = vld [vmem:[%s699_s1 + $0x120] sm:$0xff]  ;;  %v72_v39 = vld [vmem:[%s699_s1 + $0xb8] sm:$0xff] }
   0xa   :  { %v86_v36 = vld [vmem:[%s699_s1 + $0x128] sm:$0xff]  ;;  %v384_v38 = vpack.c.bf16 %v54_v33, %v53_v32  ;;  %v103_v40 = vld [vmem:[%s699_s1 + $0x1b0] sm:$0xff]  ;;  %v104_v41 = vld [vmem:[%s699_s1 + $0x1b8] sm:$0xff]  ;;  %v386_v43 = vpack.c.bf16 %v72_v39, %v71_v37 }
   0xb   :  { %381 = vmatpush3.bf16.msra.mxu0 %v380_v25  ;;  %v416_v42 = vpack.c.bf16 %v86_v36, %v85_v35  ;;  %v55_v44 = vld [vmem:[%s699_s1 + $0x30] sm:$0xff]  ;;  %v56_v45 = vld [vmem:[%s699_s1 + $0x38] sm:$0xff]  ;;  %v418_v47 = vpack.c.bf16 %v104_v41, %v103_v40  ;;  %v73_v49 = vld [vmem:[%s699_s1 + $0xc0] sm:$0xff] }
   0xc   :  { %413 = vmatpush3.bf16.msra.mxu1 %v412_v26  ;;  %383 = vmatprep.subr.bf16.mxu0 %v382_v30  ;;  %v87_v46 = vld [vmem:[%s699_s1 + $0x130] sm:$0xff]  ;;  %v88_v48 = vld [vmem:[%s699_s1 + $0x138] sm:$0xff]  ;;  %v74_v50 = vld [vmem:[%s699_s1 + $0xc8] sm:$0xff]  ;;  %v388_v53 = vpack.c.bf16 %v56_v45, %v55_v44 }
   0xd   :  { %415 = vmatprep.subr.bf16.mxu1 %v414_v34  ;;  %v105_v51 = vld [vmem:[%s699_s1 + $0x1c0] sm:$0xff]  ;;  %v106_v52 = vld [vmem:[%s699_s1 + $0x1c8] sm:$0xff]  ;;  %v420_v54 = vpack.c.bf16 %v88_v48, %v87_v46  ;;  %v390_v55 = vpack.c.bf16 %v74_v50, %v73_v49  ;;  %v75_v61 = vld [vmem:[%s699_s1 + $0xd0] sm:$0xff] }
   0xe   :  { %v57_v56 = vld [vmem:[%s699_s1 + $0x40] sm:$0xff]  ;;  %v58_v57 = vld [vmem:[%s699_s1 + $0x48] sm:$0xff]  ;;  %v422_v59 = vpack.c.bf16 %v106_v52, %v105_v51  ;;  %v76_v62 = vld [vmem:[%s699_s1 + $0xd8] sm:$0xff] }
   0xf   :  { %385 = vmatpush3.bf16.msra.mxu0 %v384_v38  ;;  %v89_v58 = vld [vmem:[%s699_s1 + $0x140] sm:$0xff]  ;;  %v90_v60 = vld [vmem:[%s699_s1 + $0x148] sm:$0xff]  ;;  %v107_v63 = vld [vmem:[%s699_s1 + $0x1d0] sm:$0xff]  ;;  %v392_v1 = vpack.c.bf16 %v58_v57, %v57_v56  ;;  %v394_v3 = vpack.c.bf16 %v76_v62, %v75_v61 }
  0x10   :  { %417 = vmatpush3.bf16.msra.mxu1 %v416_v42  ;;  %387 = vmatprep.subr.bf16.mxu0 %v386_v43  ;;  %v108_v0 = vld [vmem:[%s699_s1 + $0x1d8] sm:$0xff]  ;;  %v424_v2 = vpack.c.bf16 %v90_v60, %v89_v58  ;;  %v59_v4 = vld [vmem:[%s699_s1 + $0x50] sm:$0xff]  ;;  %v77_v9 = vld [vmem:[%s699_s1 + $0xe0] sm:$0xff] }
  0x11   :  { %419 = vmatprep.subr.bf16.mxu1 %v418_v47  ;;  %v60_v5 = vld [vmem:[%s699_s1 + $0x58] sm:$0xff]  ;;  %v91_v6 = vld [vmem:[%s699_s1 + $0x150] sm:$0xff]  ;;  %v426_v7 = vpack.c.bf16 %v108_v0, %v107_v63  ;;  %v78_v10 = vld [vmem:[%s699_s1 + $0xe8] sm:$0xff] }
  0x12   :  { %v92_v8 = vld [vmem:[%s699_s1 + $0x158] sm:$0xff]  ;;  %v109_v11 = vld [vmem:[%s699_s1 + $0x1e0] sm:$0xff]  ;;  %v110_v12 = vld [vmem:[%s699_s1 + $0x1e8] sm:$0xff]  ;;  %v396_v13 = vpack.c.bf16 %v60_v5, %v59_v4  ;;  %v398_v16 = vpack.c.bf16 %v78_v10, %v77_v9 }
  0x13   :  { %389 = vmatpush3.bf16.msra.mxu0 %v388_v53  ;;  %v61_v14 = vld [vmem:[%s699_s1 + $0x60] sm:$0xff]  ;;  %v428_v15 = vpack.c.bf16 %v92_v8, %v91_v6  ;;  %v62_v17 = vld [vmem:[%s699_s1 + $0x68] sm:$0xff] }
  0x14   :  { %421 = vmatpush3.bf16.msra.mxu1 %v420_v54  ;;  %391 = vmatprep.subr.bf16.mxu0 %v390_v55  ;;  %v93_v18 = vld [vmem:[%s699_s1 + $0x160] sm:$0xff] }
  0x15   :  { %423 = vmatprep.subr.bf16.mxu1 %v422_v59 }
  0x17   :  { %393 = vmatpush3.bf16.msra.mxu0 %v392_v1 }
  0x18   :  { %425 = vmatpush3.bf16.msra.mxu1 %v424_v2  ;;  %395 = vmatprep.subr.bf16.mxu0 %v394_v3 }
  0x19   :  { %7 = vsyncpa [#allocation3], 0  ;;  %427 = vmatprep.subr.bf16.mxu1 %v426_v7  ;;  %v430_v19 = vpack.c.bf16 %v110_v12, %v109_v11  ;;  %v94_v20 = vld [vmem:[%s699_s1 + $0x168] sm:$0xff]  ;;  %v79_v21 = vld [vmem:[%s699_s1 + $0xf0] sm:$0xff]  ;;  %v400_v25 = vpack.c.bf16 %v62_v17, %v61_v14  ;;  %v14_v35 = vlaneseq  ;;  %v469_v41 = vmov 1.0  }
  0x1a   :  { %v80_v22 = vld [vmem:[%s699_s1 + $0xf8] sm:$0xff]  ;;  %v111_v23 = vld [vmem:[%s699_s1 + $0x1f0] sm:$0xff]  ;;  %v432_v26 = vpack.c.bf16 %v94_v20, %v93_v18  ;;  %vm263_vm8 = vcmask 261120  }
  0x1b   :  { %v112_v24 = vld [vmem:[%s699_s1 + $0x1f8] sm:$0xff]  ;;  %397 = vmatpush3.bf16.msra.mxu0 %v396_v13  ;;  %v402_v27 = vpack.c.bf16 %v80_v22, %v79_v21  ;;  %v63_v28 = vld [vmem:[%s699_s1 + $0x70] sm:$0xff]  ;;  %v15_v36 = vand.u32 127, %v14_v35 }
  0x1c   :  { %429 = vmatpush3.bf16.msra.mxu1 %v428_v15  ;;  %399 = vmatprep.subr.bf16.mxu0 %v398_v16  ;;  %v64_v29 = vld [vmem:[%s699_s1 + $0x78] sm:$0xff]  ;;  %v434_v30 = vpack.c.bf16 %v112_v24, %v111_v23  ;;  %v95_v31 = vld [vmem:[%s699_s1 + $0x170] sm:$0xff] }
  0x1d   :  { %431 = vmatprep.subr.bf16.mxu1 %v430_v19  ;;  %v96_v32 = vld [vmem:[%s699_s1 + $0x178] sm:$0xff]  ;;  %v404_v33 = vpack.c.bf16 %v64_v29, %v63_v28  ;;  %v16_v37 = vadd.s32 128, %v15_v36  ;;  %v18_v38 = vadd.s32 384, %v15_v36  ;;  %v17_v39 = vadd.s32 256, %v15_v36  ;;  %s470_s1 = smov [#allocation2]  }
  0x1e   :  { %v436_v34 = vpack.c.bf16 %v96_v32, %v95_v31  ;;  %s271_s24 = sshll.u32 %s470_s1, 4  ;;  %s272_s24 = int_to_ptr.vmem [resolvable:$true] %s271_s24 }
  0x1f   :  { %401 = vmatpush3.bf16.msra.mxu0 %v400_v25  ;;  %s444_s25 = scalar_lea.vmem %s272_s24, 256  ;;  %p449_p1 = scmp.lt.s32.totalorder %s272_s24, %s272_s24 }
  0x20   :  { %433 = vmatpush3.bf16.msra.mxu1 %v432_v26  ;;  %403 = vmatprep.subr.bf16.mxu0 %v402_v27  ;;  %p445_p0 = scmp.ne.s32.totalorder %s272_s24, %s444_s25  ;;  %p450_p2 = scmp.lt.s32.totalorder %s444_s25, %s444_s25 }
  0x21   :  { %435 = vmatprep.subr.bf16.mxu1 %v434_v30 }
  0x22   :  { %p451_p3 = por %p450_p2, %p449_p1 }
  0x23   :  { %405 = vmatpush3.bf16.msra.mxu0 %v404_v33 }
  0x24   :  { %437 = vmatpush3.bf16.msra.mxu1 %v436_v34  ;;  %p452_p4 = pnand %p451_p3, %p445_p0 }
  0x81   :  { %v21_v40 = vpop.permute.xlu0 %20 }
  0x82   :  { %vm26_vm0 = vcmp.eq.s32.totalorder %v16_v37, %v21_v40  ;;  %vm28_vm1 = vcmp.eq.s32.totalorder %v18_v38, %v21_v40  ;;  %vm25_vm2 = vcmp.eq.s32.totalorder %v15_v36, %v21_v40  ;;  %vm27_vm3 = vcmp.eq.s32.totalorder %v17_v39, %v21_v40 }
  0x83   :  { %290 = vmatprep.mubr.msk.f32.mxu0 %vm26_vm0, %v469_v41  ;;  %294 = vmatprep.mubr.msk.f32.mxu1 %vm28_vm1, %v469_v41 }
  0x84   :  { %291 = vmatmul.mubr.msk.f32.vlgmr.msra.gmra.mrb[0].mxu0 %vm25_vm2, %v469_v41  ;;  %295 = vmatmul.mubr.msk.f32.vlgmr.msra.gmra.mrb[0].mxu1 %vm27_vm3, %v469_v41 }
  0x85   :  { %v24_v42 = vpop.permute.xlu0 %23 }
  0x86   :  { %vm30_vm4 = vcmp.eq.s32.totalorder %v16_v37, %v24_v42  ;;  %vm32_vm5 = vcmp.eq.s32.totalorder %v18_v38, %v24_v42  ;;  %vm29_vm6 = vcmp.eq.s32.totalorder %v15_v36, %v24_v42  ;;  %vm31_vm7 = vcmp.eq.s32.totalorder %v17_v39, %v24_v42 }
  0x87   :  { %292 = vmatprep.mubr.msk.f32.mxu0 %vm30_vm4, %v469_v41  ;;  %296 = vmatprep.mubr.msk.f32.mxu1 %vm32_vm5, %v469_v41 }
  0x88   :  { %293 = vmatmul.mubr.msk.f32.gmra.mrb[2].mxu0 %vm29_vm6, %v469_v41  ;;  %297 = vmatmul.mubr.msk.f32.gmra.mrb[2].mxu1 %vm31_vm7, %v469_v41 }
 0x157   :  { %v330_v43 = vpop.f32.mrb[0].mxu0  ;;  %v368_v44 = vpop.f32.mrb[0].mxu1 }
 0x158   :  { %v331_v45 = vpop.f32.mrb[1].mxu0  ;;  %v369_v46 = vpop.f32.mrb[1].mxu1 }
 0x159   :  { %v332_v47 = vadd.f32 %v331_v45, %v330_v43  ;;  %v370_v48 = vadd.f32 %v369_v46, %v368_v44 }
 0x15b   :  { %v255_v49 = vadd.f32 %v370_v48, %v332_v47  ;;  %v333_v50 = vpop.f32.mrb[2].mxu0  ;;  %v371_v51 = vpop.f32.mrb[2].mxu1 }
 0x15c   :  { %v334_v52 = vpop.f32.mrb[3].mxu0  ;;  %v372_v53 = vpop.f32.mrb[3].mxu1 }
 0x15d   :  { %264 = vst.msk [vmem:[#allocation2] sm:$0xff] %vm263_vm8, %v255_v49  ;;  %v335_v54 = vadd.f32 %v334_v52, %v333_v50  ;;  %v373_v55 = vadd.f32 %v372_v53, %v371_v51 }
 0x15f   :  { %v260_v56 = vadd.f32 %v373_v55, %v335_v54 }
 0x161   :  { %265 = vst.msk [vmem:[#allocation2 + $0x8] sm:$0xff] %vm263_vm8, %v260_v56 }
 0x162   :  { %455 = shalt.err (!%p452_p4)
}
 0x163   :  { %s456_s28 = scalar_lea.hbm %s700_s2, 256 }
 0x164   :  { %p457_p5 = scmp.ne.s32.totalorder %s700_s2, %s456_s28  ;;  %p460_p6 = scmp.lt.u32.totalorder %s456_s28, %s700_s2 }
 0x166   :  { %p462_p7 = pnand %p460_p6, %p457_p5 }
 0x168   :  { %465 = shalt.err (!%p462_p7)
}
 0x169   :  { %s471_s5 = smov 128   ;;  %s472_s6 = smov 8  }
 0x16a   :  { %277 = dma.vmem_to_hbm [thread:$0]  %s272_s24, 256, %s700_s2, [#allocation3], %s471_s5, %s471_s5, %s472_s6  }
 0x16b   :  { %466 = dma.done.wait [#allocation3], 256  }
 0x16c   :  { %467 = vsyncadd [#allocation3], 4294967040 }
 0x16d   :  { %281 = vsyncpa [#allocation3], 1 }

</bundles_post_ra>
